<compile_context>
chip_gen: v7x
topology: tpu7x:2x2x1
jax: 0.10.0
libtpu: 0.0.40
codegen_flags: <defaults>
</compile_context>

<pallas_src>
import functools

import jax
import jax.numpy as jnp
from jax.experimental import pallas as pl
from jax.experimental.pallas import tpu as pltpu


def _round_up(v, m):
    return (v + m - 1) // m * m


def _shift_kernel(x_ref, wy_ref, wx_ref, o_ref, t_ref):
    """One grid step processes a block of Bb batch elements.

    x_ref:  (Bb, C, Hp, Wp)  padded images (Hp % 8 == 0, Wp % 128 == 0)
    wy_ref: (Bb, h, Hp)      row interpolation matrices
    wx_ref: (Bb, h, Wp)      column interpolation matrices
    o_ref:  (Bb, h, C*h)     lane-dense output (NCHW recovered in the wrapper)
    t_ref:  (Hp, C*h)        VMEM scratch for the rearranged intermediate
    """
    Bb, C, Hp, Wp = x_ref.shape
    h = wy_ref.shape[1]
    for b in range(Bb):                           # Bb is small & static -> unrolled
        xb = x_ref[b].reshape(C * Hp, Wp)         # tile-aligned merge of (C, Hp)
        wx = wx_ref[b]                            # (h, Wp)
        wy = wy_ref[b]                            # (h, Hp)

        # Column interpolation for ALL channels in one matmul:
        #   t[c*Hp + p, j] = sum_q x[c, p, q] * wx[j, q]
        t = jax.lax.dot_general(
            xb, wx, (((1,), (1,)), ((), ())),
            preferred_element_type=jnp.float32).astype(t_ref.dtype)   # (C*Hp, h)

        # Rearrange the intermediate to (Hp, C*h) so the row interpolation is a
        # single lane-dense matmul and the output store is lane-dense too.
        for c in range(C):
            t_ref[:, c * h:(c + 1) * h] = t[c * Hp:(c + 1) * Hp, :]

        # Row interpolation for ALL channels in one matmul: (h, Hp) @ (Hp, C*h)
        o = jnp.dot(wy, t_ref[...], preferred_element_type=jnp.float32)
        o_ref[b] = o.astype(o_ref.dtype)


def _build_interp_matrix(coords, size):
    """Bilinear interpolation matrix for grid_sample(align_corners=False, padding_mode='zeros').

    coords: (n, h) normalized sample coordinates in [-1, 1] along one axis.
    Returns W: (n, h, size) float32 with  out[n, j] = sum_q W[n, j, q] * input[n, q].
    Coordinate / index math is kept in float32 for robustness.
    """
    coords = coords.astype(jnp.float32)
    ix = ((coords + 1.0) * size - 1.0) / 2.0          # unnormalize
    ix0 = jnp.floor(ix)
    ix1 = ix0 + 1.0
    w1 = ix - ix0
    w0 = 1.0 - w1

    def side(idx_f, wgt):
        idx = idx_f.astype(jnp.int32)
        valid = ((idx >= 0) & (idx < size)).astype(jnp.float32)   # zeros padding -> zero weight OOB
        idx_c = jnp.clip(idx, 0, size - 1)
        oh = jax.nn.one_hot(idx_c, size, dtype=jnp.float32)
        return oh * (wgt * valid)[..., None]

    return side(ix0, w0) + side(ix1, w1)


def _pick_block_batch(n, per_image_bytes, budget_bytes):
    """Largest divisor of n whose block fits the VMEM budget, preferring a grid >= 2."""
    best = 1
    for bb in range(1, n + 1):
        if n % bb != 0:
            continue
        if bb * per_image_bytes > budget_bytes:
            break
        if n // bb >= 2 or n == 1:
            best = bb
    return best


_VMEM_LIMIT_BYTES = 32 * 1024 * 1024      # >= scoped default on v5e/v6e/v7x, <= physical on all
_VMEM_BLOCK_BUDGET = 12 * 1024 * 1024     # target (double-buffered) working set per grid step


@functools.partial(jax.jit, static_argnames=("pad", "compute_dtype"))
def random_shifts_aug(x, key, *, pad, compute_dtype=None):
    """Pallas TPU implementation of RandomShiftsAug.forward (NCHW)."""
    n, c, h, w = x.shape
    assert h == w, "RandomShiftsAug requires square images"
    assert pad >= 0
    out_dtype = x.dtype
    cdt = jnp.dtype(compute_dtype) if compute_dtype is not None else jnp.dtype(out_dtype)

    Hp = h + 2 * pad
    Hp_a = _round_up(Hp, 8)       # sublane-aligned row count
    Wp_a = _round_up(Hp, 128)     # lane-aligned column count (dense vregs / MXU K)

    # Replicate pad (F.pad(..., 'replicate')), then zero-pad up to the tile-aligned shape.
    # The extra rows/cols receive zero interpolation weight, so results are unchanged.
    xpad = jnp.pad(x, ((0, 0), (0, 0), (pad, pad), (pad, pad)), mode="edge")
    xpad = jnp.pad(xpad, ((0, 0), (0, 0), (0, Hp_a - Hp), (0, Wp_a - Hp)))
    xpad = xpad.astype(cdt)

    # Base grid + random integer shift, exactly as in the PyTorch module (float32 math).
    # Note: shift range [0, 2*pad] plus the replicate pad keeps every sample in-bounds,
    # so the 'zeros' OOB branch of the interpolation matrices only ever sees weight ~0.
    eps = 1.0 / Hp
    arange = jnp.linspace(-1.0 + eps, 1.0 - eps, Hp, dtype=jnp.float32)[:h]          # (h,)
    shift = jax.random.randint(key, (n, 2), 0, 2 * pad + 1).astype(jnp.float32)
    shift = shift * (2.0 / Hp)                                                       # (n, 2)
    gx = arange[None, :] + shift[:, 0:1]     # x coord depends on output column j
    gy = arange[None, :] + shift[:, 1:2]     # y coord depends on output row    i

    Wx = _build_interp_matrix(gx, Hp)        # (n, h, Hp) f32
    Wy = _build_interp_matrix(gy, Hp)        # (n, h, Hp) f32
    Wx = jnp.pad(Wx, ((0, 0), (0, 0), (0, Wp_a - Hp))).astype(cdt)   # zero cols for padded q
    Wy = jnp.pad(Wy, ((0, 0), (0, 0), (0, Hp_a - Hp))).astype(cdt)   # zero cols for padded p

    # Pick how many batch elements to pack per grid step from a conservative VMEM budget.
    in_b = jnp.dtype(cdt).itemsize
    out_b = jnp.dtype(out_dtype).itemsize
    per_image = 2 * (c * Hp_a * Wp_a * in_b          # image block (double-buffered)
                     + 2 * h * Wp_a * in_b           # Wy + Wx blocks
                     + h * c * h * out_b)            # output block
    per_image += c * Hp_a * h * 4 + Hp_a * c * h * 4  # intermediates / scratch slack
    bb = _pick_block_batch(n, per_image, _VMEM_BLOCK_BUDGET)

    out2d = pl.pallas_call(
        _shift_kernel,
        out_shape=jax.ShapeDtypeStruct((n, h, c * h), out_dtype),
        grid_spec=pltpu.PrefetchScalarGridSpec(
            num_scalar_prefetch=0,
            grid=(n // bb,),
            in_specs=[
                pl.BlockSpec((bb, c, Hp_a, Wp_a), lambda i: (i, 0, 0, 0)),
                pl.BlockSpec((bb, h, Hp_a), lambda i: (i, 0, 0)),
                pl.BlockSpec((bb, h, Wp_a), lambda i: (i, 0, 0)),
            ],
            out_specs=pl.BlockSpec((bb, h, c * h), lambda i: (i, 0, 0)),
            scratch_shapes=[pltpu.VMEM((Hp_a, c * h), cdt)],
        ),
        compiler_params=pltpu.CompilerParams(
            dimension_semantics=("parallel",),
            vmem_limit_bytes=_VMEM_LIMIT_BYTES),
    )(xpad, Wy, Wx)

    # (n, h, C*h) lane-dense kernel output -> NCHW (cheap XLA layout plumbing).
    return out2d.reshape(n, h, c, h).transpose(0, 2, 1, 3)


def _reference(x, pad, key):
    """Pure-JAX reference using the same separable formulation (float32)."""
    n, c, h, w = x.shape
    Hp = h + 2 * pad
    xpad = jnp.pad(x, ((0, 0), (0, 0), (pad, pad), (pad, pad)), mode="edge").astype(jnp.float32)
    eps = 1.0 / Hp
    arange = jnp.linspace(-1.0 + eps, 1.0 - eps, Hp, dtype=jnp.float32)[:h]
    shift = jax.random.randint(key, (n, 2), 0, 2 * pad + 1).astype(jnp.float32) * (2.0 / Hp)
    gx = arange[None, :] + shift[:, 0:1]
    gy = arange[None, :] + shift[:, 1:2]
    Wx = _build_interp_matrix(gx, Hp)
    Wy = _build_interp_matrix(gy, Hp)
    return jnp.einsum("nip,ncpq,njq->ncij", Wy, xpad, Wx)


if __name__ == "__main__":
    pad = 4
    n, c, h, w = 2, 4, 16, 16

    root = jax.random.PRNGKey(0)
    k_x, k_shift = jax.random.split(root)
    x = jax.random.normal(k_x, (n, c, h, w), dtype=jnp.float32)

    ref = _reference(x, pad, k_shift)

    # float32 operand path (bit-for-bit-ish against the reference)
    out = random_shifts_aug(x, k_shift, pad=pad)
    out = jax.block_until_ready(out)
    assert out.shape == (n, c, h, w)
    assert jnp.allclose(out, ref, atol=1e-5, rtol=1e-5)

    # bf16 operand path (halves HBM traffic for the memory-bound case; f32 accumulation)
    out_bf16 = random_shifts_aug(x, k_shift, pad=pad, compute_dtype=jnp.bfloat16)
    out_bf16 = jax.block_until_ready(out_bf16)
    assert out_bf16.shape == (n, c, h, w)
    assert jnp.allclose(out_bf16.astype(jnp.float32), ref, atol=0.1, rtol=0.1)

    print("KERNEL_OK")
</pallas_src>

<mosaic_0001>
module attributes {stable_mosaic.version = 11 : i64} {
  func.func @_shift_kernel(%arg0: i32, %arg1: memref<1x4x24x128xf32, #tpu.memory_space<vmem>>, %arg2: memref<1x16x24xf32, #tpu.memory_space<vmem>>, %arg3: memref<1x16x128xf32, #tpu.memory_space<vmem>>, %arg4: memref<1x16x64xf32, #tpu.memory_space<vmem>>, %arg5: memref<24x64xf32, #tpu.memory_space<vmem>>) attributes {dimension_semantics = [#tpu.dimension_semantics<parallel>], iteration_bounds = array<i64: 2>, scalar_prefetch = 0 : i64, scratch_operands = 1 : i64, tpu.core_type = #tpu.core_type<tc>, window_params = [{transform_indices = @transform_0, window_bounds = array<i64: 1, 4, 24, 128>}, {transform_indices = @transform_1, window_bounds = array<i64: 1, 16, 24>}, {transform_indices = @transform_2, window_bounds = array<i64: 1, 16, 128>}, {transform_indices = @transform_3, window_bounds = array<i64: 1, 16, 64>}]} {
    %c0 = arith.constant 0 : index
    %c0_0 = arith.constant 0 : index
    %c0_1 = arith.constant 0 : index
    %c0_2 = arith.constant 0 : index
    %0 = vector.load %arg1[%c0, %c0_0, %c0_1, %c0_2] : memref<1x4x24x128xf32, #tpu.memory_space<vmem>>, vector<1x4x24x128xf32>
    %1 = vector.shape_cast %0 : vector<1x4x24x128xf32> to vector<4x24x128xf32>
    %2 = vector.shape_cast %1 : vector<4x24x128xf32> to vector<96x128xf32>
    %c0_3 = arith.constant 0 : index
    %c0_4 = arith.constant 0 : index
    %c0_5 = arith.constant 0 : index
    %3 = vector.load %arg3[%c0_3, %c0_4, %c0_5] : memref<1x16x128xf32, #tpu.memory_space<vmem>>, vector<1x16x128xf32>
    %4 = vector.shape_cast %3 : vector<1x16x128xf32> to vector<16x128xf32>
    %c0_6 = arith.constant 0 : index
    %c0_7 = arith.constant 0 : index
    %c0_8 = arith.constant 0 : index
    %5 = vector.load %arg2[%c0_6, %c0_7, %c0_8] : memref<1x16x24xf32, #tpu.memory_space<vmem>>, vector<1x16x24xf32>
    %6 = vector.shape_cast %5 : vector<1x16x24xf32> to vector<16x24xf32>
    %cst = arith.constant dense<0.000000e+00> : vector<96x16xf32>
    %7 = tpu.matmul %2, %4, %cst {dimension_numbers = #tpu.dot_dimension_numbers<[1], [1], [0], [0], [0, 0, 1, 0], [], []>} : vector<96x128xf32>, vector<16x128xf32>, vector<96x16xf32> -> vector<96x16xf32>
    %8 = vector.extract_strided_slice %7 {offsets = [0, 0], sizes = [24, 16], strides = [1, 1]} : vector<96x16xf32> to vector<24x16xf32>
    %c0_9 = arith.constant 0 : index
    %c0_10 = arith.constant 0 : index
    %9 = vector.load %arg5[%c0_9, %c0_10] : memref<24x64xf32, #tpu.memory_space<vmem>>, vector<24x16xf32>
    tpu.vector_store %arg5[%c0_9, %c0_10], %8 {strides = array<i32>} : memref<24x64xf32, #tpu.memory_space<vmem>>, vector<24x16xf32>,
    %10 = vector.extract_strided_slice %7 {offsets = [24, 0], sizes = [24, 16], strides = [1, 1]} : vector<96x16xf32> to vector<24x16xf32>
    %c0_11 = arith.constant 0 : index
    %c16 = arith.constant 16 : index
    %11 = vector.load %arg5[%c0_11, %c16] : memref<24x64xf32, #tpu.memory_space<vmem>>, vector<24x16xf32>
    tpu.vector_store %arg5[%c0_11, %c16], %10 {strides = array<i32>} : memref<24x64xf32, #tpu.memory_space<vmem>>, vector<24x16xf32>,
    %12 = vector.extract_strided_slice %7 {offsets = [48, 0], sizes = [24, 16], strides = [1, 1]} : vector<96x16xf32> to vector<24x16xf32>
    %c0_12 = arith.constant 0 : index
    %c32 = arith.constant 32 : index
    %13 = vector.load %arg5[%c0_12, %c32] : memref<24x64xf32, #tpu.memory_space<vmem>>, vector<24x16xf32>
    tpu.vector_store %arg5[%c0_12, %c32], %12 {strides = array<i32>} : memref<24x64xf32, #tpu.memory_space<vmem>>, vector<24x16xf32>,
    %14 = vector.extract_strided_slice %7 {offsets = [72, 0], sizes = [24, 16], strides = [1, 1]} : vector<96x16xf32> to vector<24x16xf32>
    %c0_13 = arith.constant 0 : index
    %c48 = arith.constant 48 : index
    %15 = vector.load %arg5[%c0_13, %c48] : memref<24x64xf32, #tpu.memory_space<vmem>>, vector<24x16xf32>
    tpu.vector_store %arg5[%c0_13, %c48], %14 {strides = array<i32>} : memref<24x64xf32, #tpu.memory_space<vmem>>, vector<24x16xf32>,
    %c0_14 = arith.constant 0 : index
    %c0_15 = arith.constant 0 : index
    %16 = vector.load %arg5[%c0_14, %c0_15] : memref<24x64xf32, #tpu.memory_space<vmem>>, vector<24x64xf32>
    %cst_16 = arith.constant dense<0.000000e+00> : vector<16x64xf32>
    %17 = tpu.matmul %6, %16, %cst_16 {dimension_numbers = #tpu.dot_dimension_numbers<[1], [0], [0], [1], [0, 0, 1, 1], [], []>} : vector<16x24xf32>, vector<24x64xf32>, vector<16x64xf32> -> vector<16x64xf32>
    %c0_17 = arith.constant 0 : index
    %c0_18 = arith.constant 0 : index
    %c0_19 = arith.constant 0 : index
    %18 = vector.load %arg4[%c0_17, %c0_18, %c0_19] : memref<1x16x64xf32, #tpu.memory_space<vmem>>, vector<1x16x64xf32>
    %19 = vector.shape_cast %18 : vector<1x16x64xf32> to vector<16x64xf32>
    %20 = vector.shape_cast %17 : vector<16x64xf32> to vector<1x16x64xf32>
    tpu.vector_store %arg4[%c0_17, %c0_18, %c0_19], %20 {strides = array<i32>} : memref<1x16x64xf32, #tpu.memory_space<vmem>>, vector<1x16x64xf32>,
    return
  }
  func.func @transform_0(%arg0: i32) -> (i32, i32, i32, i32) {
    %c0_i32 = arith.constant 0 : i32
    %c0_i32_0 = arith.constant 0 : i32
    %c0_i32_1 = arith.constant 0 : i32
    %c0_i32_2 = arith.constant 0 : i32
    return %arg0, %c0_i32, %c0_i32_0, %c0_i32_1 : i32, i32, i32, i32
  }
  func.func @transform_1(%arg0: i32) -> (i32, i32, i32) {
    %c0_i32 = arith.constant 0 : i32
    %c0_i32_0 = arith.constant 0 : i32
    %c0_i32_1 = arith.constant 0 : i32
    return %arg0, %c0_i32, %c0_i32_0 : i32, i32, i32
  }
  func.func @transform_2(%arg0: i32) -> (i32, i32, i32) {
    %c0_i32 = arith.constant 0 : i32
    %c0_i32_0 = arith.constant 0 : i32
    %c0_i32_1 = arith.constant 0 : i32
    return %arg0, %c0_i32, %c0_i32_0 : i32, i32, i32
  }
  func.func @transform_3(%arg0: i32) -> (i32, i32, i32) {
    %c0_i32 = arith.constant 0 : i32
    %c0_i32_0 = arith.constant 0 : i32
    %c0_i32_1 = arith.constant 0 : i32
    return %arg0, %c0_i32, %c0_i32_0 : i32, i32, i32
  }
}

</mosaic_0001>

<bundles_post_ra>
// kernel: random_shifts_aug.1
= control target key start
LH: loop header
LB: loop body
LE: loop exit
PB: predicated region body
PF: predicated region fallthrough
CT: control target
= control target key end

     0   :  { %s693_s12 = smov 0   ;;  %s727_s0 = inlined_call_operand.vmem [shape: f32[2,4,24,128], index: 0, kind: input, shape index: {}]   ;;  %s728_s1 = inlined_call_operand.vmem [shape: f32[2,16,24], index: 1, kind: input, shape index: {}]   ;;  %s729_s2 = inlined_call_operand.vmem [shape: f32[2,16,128], index: 2, kind: input, shape index: {}]   ;;  %s730_s3 = inlined_call_operand.vmem [shape: f32[2,16,64], index: 3, kind: output, shape index: {}]  }
   0x1 LB: > { %s571_s13 = sadd.s32 4294967295, %s668_s12   ;;  %p575_p0 = scmp.ge.s32.totalorder %s668_s12, 1  ;;  %s668_s12 = sphi %s693_s12, %s13_s12  }
   0x2   : > { %p157_p1 = scmp.lt.s32.totalorder %s668_s12, 3 }
   0x4   : > { %p158_p2 = pnand %p575_p0, %p157_p1 }
   0x5   : > { %p191_p3 = scmp.lt.s32.totalorder (!%p158_p2), %s571_s13, 1  ;;  %vm352_vm0 = vcmask (!%p158_p2), 130048   ;;  %s670_s22 = smov (!%p158_p2), 48   ;;  %vm407_vm1 = vcmask (!%p158_p2), 195584   ;;  %vm368_vm2 = vcmask (!%p158_p2), 261248   ;;  %vm384_vm3 = vcmask (!%p158_p2), 392448  }
   0x6   : > { %161 = sbr.rel (%p158_p2) target bundleno = 604 (0x25c), region = 32  ;;  %s671_s23 = smov (!%p158_p2), 16   ;;  %vm400_vm4 = vcmask (!%p158_p2), 523648   ;;  %vm489_vm5 = vcmask (!%p158_p2), 523264  }
   0x7   : > { %s672_s24 = smov (!%p158_p2), 32  }
   0xd   : > { %s732_s13 = smov (!%p191_p3, %s571_s13), 1 }
   0xe   : > { %s650_s14 = smul.u32 96, %s732_s13  ;;  %s701_s15 = sshll.u32 %s732_s13, 4 }
   0xf   : > { %s205_s18 = scalar_lea.vmem %s729_s2, %s701_s15  ;;  %s714_s27 = scalar_lea.vmem %s728_s1, %s701_s15 }
  0x10   : > { %s195_s21 = scalar_lea.vmem %s727_s0, %s650_s14  ;;  %v223_v0 = vld [vmem:[%s205_s18] sm:$0xff]  ;;  %v224_v1 = vld [vmem:[%s205_s18 + $0x8] sm:$0xff]  ;;  %s210_s30 = scalar_lea.vmem %s730_s3, %s701_s15 }
  0x11   : > { %v640_v2 = vpack.c.bf16 %v224_v1, %v223_v0  ;;  %v211_v3 = vld [vmem:[%s195_s21] sm:$0xff]  ;;  %v212_v5 = vld [vmem:[%s195_s21 + $0x8] sm:$0xff]  ;;  %v213_v7 = vld [vmem:[%s195_s21 + $0x10] sm:$0xff] }
  0x12   : > { %v219_v4 = vld [vmem:[%s195_s21 + $0x40] sm:$0xff]  ;;  %613 = vmatprep.mubr.f32.mxu0 %v211_v3  ;;  %v220_v6 = vld [vmem:[%s195_s21 + $0x48] sm:$0xff]  ;;  %v221_v8 = vld [vmem:[%s195_s21 + $0x50] sm:$0xff] }
  0x13   : > { %625 = vmatprep.mubr.f32.mxu1 %v219_v4  ;;  %641 = vmatprep.subr.bf16.mxu0 %v640_v2  ;;  %v214_v9 = vld [vmem:[%s195_s21 + $0x18] sm:$0xff]  ;;  %v215_v11 = vld [vmem:[%s195_s21 + $0x20] sm:$0xff]  ;;  %v216_v12 = vld [vmem:[%s195_s21 + $0x28] sm:$0xff] }
  0x14   : > { %648 = vmatprep.subr.bf16.mxu1 %v640_v2  ;;  %643 = vmatpush3.bf16.xpose.msra.mxu0 %v640_v2  ;;  %v222_v10 = vld [vmem:[%s195_s21 + $0x58] sm:$0xff]  ;;  %v217_v13 = vld [vmem:[%s195_s21 + $0x30] sm:$0xff]  ;;  %v225_v27 = vld [vmem:[%s714_s27] sm:$0xff] }
  0x15   : > { %649 = vmatpush3.bf16.xpose.msra.mxu1 %v640_v2  ;;  %v218_v14 = vld [vmem:[%s195_s21 + $0x38] sm:$0xff]  ;;  %v226_v41 = vld [vmem:[%s714_s27 + $0x8] sm:$0xff] }
  0x1b   : > { %614 = vmatmul.mubr.f32.vlgmr.msra.gmra.mrb[0].mxu0 %v212_v5 }
  0x1c   : > { %626 = vmatmul.mubr.f32.vlgmr.msra.gmra.mrb[0].mxu1 %v220_v6  ;;  %616 = vmatprep.mubr.f32.mxu0 %v213_v7 }
  0x1d   : > { %628 = vmatprep.mubr.f32.mxu1 %v221_v8 }
  0x1f   : > { %617 = vmatmul.mubr.f32.gmra.mrb[2].mxu0 %v214_v9 }
  0x20   : > { %629 = vmatmul.mubr.f32.gmra.mrb[2].mxu1 %v222_v10  ;;  %619 = vmatprep.mubr.f32.mxu0 %v215_v11 }
  0x21   : > { %637 = vmatprep.mubr.msk.f32.mxu1 %vm407_vm1, %v225_v27 }
  0x23   : > { %620 = vmatmul.mubr.f32.gmra.mrb[4].mxu0 %v216_v12 }
  0x24   : > { %622 = vmatprep.mubr.f32.mxu0 %v217_v13 }
  0x27   : > { %623 = vmatmul.mubr.f32.gmra.mrb[6].mxu0 %v218_v14 }
  0xee   : > { %v615_v15 = vpop.f32.mrb[0].mxu0 }
  0xef   : > { %v627_v16 = vpop.f32.mrb[0].mxu1  ;;  %354 = vst.msk [vmem:[#allocation2 + $0x8] sm:$0xff] %vm352_vm0, %v615_v15  ;;  %v293_v17 = vpop.f32.mrb[1].mxu0 }
  0xf0   : > { %391 = vrot.lane.b32.xlu0 %v627_v16, %s670_s22  ;;  %v333_v18 = vpop.f32.mrb[1].mxu1  ;;  %353 = vst.msk [vmem:[#allocation2] sm:$0xff] %vm352_vm0, %v293_v17 }
  0xf2   : > { %v618_v19 = vpop.f32.mrb[2].mxu0 }
  0xf3   : > { %v630_v20 = vpop.f32.mrb[2].mxu1  ;;  %v303_v21 = vpop.f32.mrb[3].mxu0 }
  0xf4   : > { %359 = vrot.lane.b32.xlu0 %v618_v19, %s671_s23  ;;  %v343_v22 = vpop.f32.mrb[3].mxu1  ;;  %355 = vst.msk [vmem:[#allocation2 + $0x10] sm:$0xff] %vm352_vm0, %v303_v21 }
  0xf6   : > { %v621_v23 = vpop.f32.mrb[4].mxu0 }
  0xf7   : > { %v313_v24 = vpop.f32.mrb[5].mxu0 }
  0xf8   : > { %361 = vrot.lane.b32.xlu0 %v313_v24, %s671_s23 }
  0xfa   : > { %v624_v25 = vpop.f32.mrb[6].mxu0 }
  0xfb   : > { %377 = vrot.lane.b32.xlu1 %v624_v25, %s672_s24  ;;  %v323_v26 = vpop.f32.mrb[7].mxu0 }
  0xfc   : > { %363 = vrot.lane.b32.xlu0 %v621_v23, %s671_s23 }
  0xff   : > { %375 = vrot.lane.b32.xlu1 %v323_v26, %s672_s24 }
 0x100   : > { %395 = vrot.lane.b32.xlu0 %v630_v20, %s670_s22 }
 0x103   : > { %393 = vrot.lane.b32.xlu1 %v343_v22, %s670_s22 }
 0x107   : > { %379 = vrot.lane.b32.xlu1 %v333_v18, %s672_s24 }
 0x162   : > { %v392_v28 = vpop.permute.xlu0 %391 }
 0x166   : > { %v360_v29 = vpop.permute.xlu0 %359 }
 0x167   : > { %369 = vst.msk [vmem:[#allocation2] sm:$0xff] %vm368_vm2, %v360_v29 }
 0x16a   : > { %v362_v30 = vpop.permute.xlu0 %361 }
 0x16b   : > { %370 = vst.msk [vmem:[#allocation2 + $0x8] sm:$0xff] %vm368_vm2, %v362_v30 }
 0x16d   : > { %v378_v31 = vpop.permute.xlu1 %377 }
 0x16e   : > { %386 = vst.msk [vmem:[#allocation2 + $0x8] sm:$0xff] %vm384_vm3, %v378_v31  ;;  %v364_v32 = vpop.permute.xlu0 %363 }
 0x16f   : > { %371 = vst.msk [vmem:[#allocation2 + $0x10] sm:$0xff] %vm368_vm2, %v364_v32 }
 0x171   : > { %v376_v33 = vpop.permute.xlu1 %375 }
 0x172   : > { %385 = vst.msk [vmem:[#allocation2] sm:$0xff] %vm384_vm3, %v376_v33  ;;  %v396_v36 = vpop.permute.xlu0 %395 }
 0x173   : > { %401 = vst.msk [vmem:[#allocation2] sm:$0xff] %vm400_vm4, %v392_v28 }
 0x175   : > { %v394_v34 = vpop.permute.xlu1 %393 }
 0x176   : > { %402 = vst.msk [vmem:[#allocation2 + $0x8] sm:$0xff] %vm400_vm4, %v394_v34 }
 0x179   : > { %v380_v35 = vpop.permute.xlu1 %379 }
 0x17a   : > { %387 = vst.msk [vmem:[#allocation2 + $0x10] sm:$0xff] %vm384_vm3, %v380_v35  ;;  %v404_v37 = vld [vmem:[#allocation2] sm:$0xff] }
 0x17b   : > { %403 = vst.msk [vmem:[#allocation2 + $0x10] sm:$0xff] %vm400_vm4, %v396_v36 }
 0x17d   : > { %v405_v38 = vld [vmem:[#allocation2 + $0x8] sm:$0xff] }
 0x17e   : > { %v644_v39 = vpack.c.bf16 %v405_v38, %v404_v37 }
 0x180   : > { %645 = vmatprep.subr.bf16.mxu1 %v644_v39 }
 0x181   : > { %647 = vmatpush3.bf16.msra.mxu1 %v644_v39 }
 0x182   : > { %v406_v40 = vld [vmem:[#allocation2 + $0x10] sm:$0xff] }
 0x183   : > { %635 = vmatprep.subr.mxu1 %v406_v40 }
 0x185   : > { %636 = vmatpush3.msra.mxu1 %v406_v40 }
 0x186   : > { %638 = vmatmul.mubr.msk.f32.vlgmr.msra.gmra.mrb[4].mxu1 %vm407_vm1, %v226_v41 }
 0x259   : > { %v639_v42 = vpop.f32.mrb[4].mxu1 }
 0x25a   : > { %491 = vst.msk [vmem:[%s210_s30 + $0x8] sm:$0xff] %vm489_vm5, %v639_v42  ;;  %v480_v43 = vpop.f32.mrb[5].mxu1 }
 0x25b   : > { %490 = vst.msk [vmem:[%s210_s30] sm:$0xff] %vm489_vm5, %v480_v43 }
 0x25c PF: > { %s13_s12 = sadd.s32 1, %s668_s12  }
 0x25d   : > { %p10_p4 = scmp.ge.s32.totalorder %s13_s12, 4  }
 0x25f   :  { %12 = sbr.rel (!%p10_p4) target bundleno = 1 (0x1), region = 68 }

</bundles_post_ra>
